<compile_context>
chip_gen: v7x
topology: tpu7x:2x2x1
jax: 0.10.0
libtpu: 0.0.40
codegen_flags: <defaults>
</compile_context>

<pallas_src>
import functools

import jax
import jax.numpy as jnp
from jax.experimental import pallas as pl
from jax.experimental.pallas import tpu as pltpu


def _round_up(x: int, m: int) -> int:
    return ((x + m - 1) // m) * m


def _tpu_generation_info():
    """Return (num_tensorcores_per_chip, is_v7x). Falls back to (1, False)."""
    try:
        kind = jax.devices()[0].device_kind.lower()
    except Exception:  # pragma: no cover - non-TPU / interpret fallback
        return 1, False
    is_v7x = ("v7" in kind) or ("7x" in kind)
    return (2, True) if is_v7x else (1, False)


def _pick_block_rows(n: int, block_rows: int, num_tc: int) -> int:
    """Row tile: multiple of 8, as large as requested; only split for multi-TC parts."""
    br = max(8, (block_rows // 8) * 8)          # unconditional sublane alignment
    br = min(br, _round_up(n, 8))               # never bigger than the (padded) batch
    if num_tc > 1:
        # v7x: keep >= num_tc tiles and a tile count that is a multiple of num_tc so
        # megacore sharding stays balanced (padding does not all land on one core).
        br = min(br, max(8, _round_up(pl.cdiv(n, num_tc), 8)))
        tiles = _round_up(pl.cdiv(n, br), num_tc)
        br = max(8, _round_up(pl.cdiv(n, tiles), 8))
    return br


def mlp_calw_kernel(x_ref, w1_ref, b1_ref, w2_ref, b2_ref, w3_ref, b3_ref, o_ref):
    x = x_ref[...]

    # Linear(in_channels -> hidden)
    h = jnp.dot(x, w1_ref[...], preferred_element_type=jnp.float32) + b1_ref[...]

    # Linear(hidden -> hidden) + LeakyReLU(negative_slope=0.01)
    h = jnp.dot(h, w2_ref[...], preferred_element_type=jnp.float32) + b2_ref[...]
    h = jnp.where(h >= 0, h, 0.01 * h)

    # Linear(hidden -> out_lanes); padded lanes have zero weights and bias = -1e30,
    # so they vanish under the softmax below.
    logits = jnp.dot(h, w3_ref[...], preferred_element_type=jnp.float32) + b3_ref[...]

    # softmax over the class / predictor axis (dim=1), numerically stabilized.
    # Exact divide (not pl.reciprocal(approx=True)) so rows sum to 1 to f32 precision.
    m = jnp.max(logits, axis=-1, keepdims=True)
    e = jnp.exp(logits - m)
    denom = jnp.sum(e, axis=-1, keepdims=True)
    o_ref[...] = (e / denom).astype(o_ref.dtype)


@functools.partial(jax.jit, static_argnames=("block_rows", "num_tc", "is_v7x"))
def _mlp_calw_forward_impl(x, w1, b1, w2, b2, w3, b3, *, block_rows, num_tc, is_v7x):
    n, cin = x.shape
    hid = w1.shape[1]
    cout = w3.shape[1]

    br = _pick_block_rows(n, block_rows, num_tc)
    n_pad = _round_up(n, br)

    # Lane-dense hidden and output widths (multiples of 128).
    hid_p = _round_up(max(hid, 128), 128)
    out_lanes = _round_up(max(cout, 128), 128)

    # Pad: batch rows with zeros (sliced off afterwards), hidden dim with zero
    # weights/biases (exactly preserved by Linear + LeakyReLU), output classes with
    # zero weights and -1e30 bias (softmax contribution exactly 0).
    x_p = jnp.pad(x, ((0, n_pad - n), (0, 0)))
    w1_p = jnp.pad(w1, ((0, 0), (0, hid_p - hid)))
    b1_p = jnp.pad(b1, ((0, 0), (0, hid_p - hid)))
    w2_p = jnp.pad(w2, ((0, hid_p - hid), (0, hid_p - hid)))
    b2_p = jnp.pad(b2, ((0, 0), (0, hid_p - hid)))
    w3_p = jnp.pad(w3, ((0, hid_p - hid), (0, out_lanes - cout)))
    b3_p = jnp.pad(b3, ((0, 0), (0, out_lanes - cout)), constant_values=-1e30)

    grid = (n_pad // br,)

    # --- VMEM budget (explicit on every generation; v7x has only 64 MiB physical). ---
    weight_bytes = 4 * (cin * hid_p + hid_p + hid_p * hid_p + hid_p
                        + hid_p * out_lanes + out_lanes)
    per_step_bytes = (2 * br * cin * 4           # x tile, double-buffered
                      + 2 * br * out_lanes * 4   # out tile, double-buffered
                      + 2 * weight_bytes         # resident weights, default double-buffered
                      + 4 * br * hid_p * 4)      # activation intermediates headroom
    vmem_cap = (48 << 20) if is_v7x else (100 << 20)
    # TODO(synk): K-tile the W2 contraction (trailing "arbitrary" axis + f32 accumulator)
    # instead of asserting once hidden_dim grows past what fits resident on v7x.
    assert per_step_bytes <= vmem_cap, (
        f"resident weights/tiles ({per_step_bytes} B) exceed the VMEM budget "
        f"({vmem_cap} B); K-tile W2 or shrink block_rows")
    vmem_limit = min(max(per_step_bytes + (8 << 20), 32 << 20), vmem_cap)

    # Advisory cost estimate so XLA schedules the custom call vs. the pad/slice ops.
    cost = pl.CostEstimate(
        flops=2 * n_pad * (cin * hid_p + hid_p * hid_p + hid_p * out_lanes),
        transcendentals=n_pad * out_lanes,
        bytes_accessed=int(x_p.size * 4 + n_pad * out_lanes * 4 + weight_bytes),
    )

    out = pl.pallas_call(
        mlp_calw_kernel,
        out_shape=jax.ShapeDtypeStruct((n_pad, out_lanes), jnp.float32),
        grid_spec=pltpu.PrefetchScalarGridSpec(
            num_scalar_prefetch=0,
            grid=grid,
            in_specs=[
                pl.BlockSpec((br, cin), lambda i: (i, 0)),            # x row tile
                pl.BlockSpec((cin, hid_p), lambda i: (0, 0)),         # W1 (invariant)
                pl.BlockSpec((1, hid_p), lambda i: (0, 0)),           # b1 (invariant)
                pl.BlockSpec((hid_p, hid_p), lambda i: (0, 0)),       # W2 (invariant)
                pl.BlockSpec((1, hid_p), lambda i: (0, 0)),           # b2 (invariant)
                pl.BlockSpec((hid_p, out_lanes), lambda i: (0, 0)),   # W3 padded (invariant)
                pl.BlockSpec((1, out_lanes), lambda i: (0, 0)),       # b3 padded (invariant)
            ],
            out_specs=pl.BlockSpec((br, out_lanes), lambda i: (i, 0)),
        ),
        compiler_params=pltpu.CompilerParams(
            dimension_semantics=("parallel",),
            vmem_limit_bytes=int(vmem_limit),
        ),
        cost_estimate=cost,
    )(x_p, w1_p, b1_p, w2_p, b2_p, w3_p, b3_p)

    return out[:n, :cout]


def mlp_calw_forward(x, w1, b1, w2, b2, w3, b3, *, block_rows=512):
    num_tc, is_v7x = _tpu_generation_info()
    return _mlp_calw_forward_impl(x, w1, b1, w2, b2, w3, b3,
                                  block_rows=block_rows, num_tc=num_tc, is_v7x=is_v7x)


def init_params(key, in_channels, hidden_dim, out_channels):
    """Deterministic PyTorch-Linear-style uniform init: U(-1/sqrt(fan_in), 1/sqrt(fan_in))."""
    ks = jax.random.split(key, 6)

    def lin(kw, kb, fan_in, fan_out):
        bound = 1.0 / jnp.sqrt(fan_in)
        w = jax.random.uniform(kw, (fan_in, fan_out), jnp.float32, -bound, bound)
        b = jax.random.uniform(kb, (1, fan_out), jnp.float32, -bound, bound)
        return w, b

    w1, b1 = lin(ks[0], ks[1], in_channels, hidden_dim)
    w2, b2 = lin(ks[2], ks[3], hidden_dim, hidden_dim)
    w3, b3 = lin(ks[4], ks[5], hidden_dim, out_channels)
    return w1, b1, w2, b2, w3, b3


def reference_forward(x, w1, b1, w2, b2, w3, b3):
    h = x @ w1 + b1
    h = h @ w2 + b2
    h = jnp.where(h >= 0, h, 0.01 * h)
    logits = h @ w3 + b3
    return jax.nn.softmax(logits, axis=1)


if __name__ == "__main__":
    # small shapes: N=16 samples, in_channels=4 (class point predictions),
    # hidden_dim=32, out_channels=3 (predictors in the convex combination).
    N, C_IN, HID, C_OUT = 16, 4, 32, 3

    key = jax.random.PRNGKey(0)
    kx, kp = jax.random.split(key)
    x = jax.random.normal(kx, (N, C_IN), dtype=jnp.float32)
    params = init_params(kp, C_IN, HID, C_OUT)

    out = mlp_calw_forward(x, *params)
    out = jax.block_until_ready(out)

    ref = reference_forward(x, *params)
    assert out.shape == (N, C_OUT)
    assert jnp.allclose(out, ref, atol=1e-5, rtol=1e-5), "mismatch vs reference"
    assert jnp.allclose(jnp.sum(out, axis=1), 1.0, atol=1e-5), "softmax rows must sum to 1"

    print("KERNEL_OK")
</pallas_src>

<mosaic_0001>
module attributes {stable_mosaic.version = 11 : i64} {
  func.func @mlp_calw_kernel(%arg0: i32, %arg1: memref<16x4xf32, #tpu.memory_space<vmem>>, %arg2: memref<4x128xf32, #tpu.memory_space<vmem>>, %arg3: memref<1x128xf32, #tpu.memory_space<vmem>>, %arg4: memref<128x128xf32, #tpu.memory_space<vmem>>, %arg5: memref<1x128xf32, #tpu.memory_space<vmem>>, %arg6: memref<128x128xf32, #tpu.memory_space<vmem>>, %arg7: memref<1x128xf32, #tpu.memory_space<vmem>>, %arg8: memref<16x128xf32, #tpu.memory_space<vmem>>) attributes {dimension_semantics = [#tpu.dimension_semantics<parallel>], iteration_bounds = array<i64: 1>, scalar_prefetch = 0 : i64, scratch_operands = 0 : i64, tpu.core_type = #tpu.core_type<tc>, window_params = [{transform_indices = @transform_0, window_bounds = array<i64: 16, 4>}, {pipeline_mode = #tpu.pipeline_mode<synchronous>, transform_indices = @transform_1, window_bounds = array<i64: 4, 128>}, {pipeline_mode = #tpu.pipeline_mode<synchronous>, transform_indices = @transform_2, window_bounds = array<i64: 1, 128>}, {pipeline_mode = #tpu.pipeline_mode<synchronous>, transform_indices = @transform_3, window_bounds = array<i64: 128, 128>}, {pipeline_mode = #tpu.pipeline_mode<synchronous>, transform_indices = @transform_4, window_bounds = array<i64: 1, 128>}, {pipeline_mode = #tpu.pipeline_mode<synchronous>, transform_indices = @transform_5, window_bounds = array<i64: 128, 128>}, {pipeline_mode = #tpu.pipeline_mode<synchronous>, transform_indices = @transform_6, window_bounds = array<i64: 1, 128>}, {transform_indices = @transform_7, window_bounds = array<i64: 16, 128>}]} {
    %c0 = arith.constant 0 : index
    %c0_0 = arith.constant 0 : index
    %0 = vector.load %arg1[%c0, %c0_0] : memref<16x4xf32, #tpu.memory_space<vmem>>, vector<16x4xf32>
    %c0_1 = arith.constant 0 : index
    %c0_2 = arith.constant 0 : index
    %1 = vector.load %arg2[%c0_1, %c0_2] : memref<4x128xf32, #tpu.memory_space<vmem>>, vector<4x128xf32>
    %cst = arith.constant dense<0.000000e+00> : vector<16x128xf32>
    %2 = tpu.matmul %0, %1, %cst {dimension_numbers = #tpu.dot_dimension_numbers<[1], [0], [0], [1], [0, 0, 1, 1], [], []>} : vector<16x4xf32>, vector<4x128xf32>, vector<16x128xf32> -> vector<16x128xf32>
    %c0_3 = arith.constant 0 : index
    %c0_4 = arith.constant 0 : index
    %3 = vector.load %arg3[%c0_3, %c0_4] : memref<1x128xf32, #tpu.memory_space<vmem>>, vector<1x128xf32>
    %4 = vector.broadcast %3 : vector<1x128xf32> to vector<16x128xf32>
    %5 = arith.addf %2, %4 : vector<16x128xf32>
    %c0_5 = arith.constant 0 : index
    %c0_6 = arith.constant 0 : index
    %6 = vector.load %arg4[%c0_5, %c0_6] : memref<128x128xf32, #tpu.memory_space<vmem>>, vector<128x128xf32>
    %cst_7 = arith.constant dense<0.000000e+00> : vector<16x128xf32>
    %7 = tpu.matmul %5, %6, %cst_7 {dimension_numbers = #tpu.dot_dimension_numbers<[1], [0], [0], [1], [0, 0, 1, 1], [], []>} : vector<16x128xf32>, vector<128x128xf32>, vector<16x128xf32> -> vector<16x128xf32>
    %c0_8 = arith.constant 0 : index
    %c0_9 = arith.constant 0 : index
    %8 = vector.load %arg5[%c0_8, %c0_9] : memref<1x128xf32, #tpu.memory_space<vmem>>, vector<1x128xf32>
    %9 = vector.broadcast %8 : vector<1x128xf32> to vector<16x128xf32>
    %10 = arith.addf %7, %9 : vector<16x128xf32>
    %cst_10 = arith.constant 0.000000e+00 : f32
    %11 = vector.broadcast %cst_10 : f32 to vector<16x128xf32>
    %12 = arith.cmpf oge, %10, %11 : vector<16x128xf32>
    %cst_11 = arith.constant 0.00999999977 : f32
    %13 = vector.broadcast %cst_11 : f32 to vector<16x128xf32>
    %14 = arith.mulf %13, %10 : vector<16x128xf32>
    %15 = arith.select %12, %10, %14 : vector<16x128xi1>, vector<16x128xf32>
    %c0_12 = arith.constant 0 : index
    %c0_13 = arith.constant 0 : index
    %16 = vector.load %arg6[%c0_12, %c0_13] : memref<128x128xf32, #tpu.memory_space<vmem>>, vector<128x128xf32>
    %cst_14 = arith.constant dense<0.000000e+00> : vector<16x128xf32>
    %17 = tpu.matmul %15, %16, %cst_14 {dimension_numbers = #tpu.dot_dimension_numbers<[1], [0], [0], [1], [0, 0, 1, 1], [], []>} : vector<16x128xf32>, vector<128x128xf32>, vector<16x128xf32> -> vector<16x128xf32>
    %c0_15 = arith.constant 0 : index
    %c0_16 = arith.constant 0 : index
    %18 = vector.load %arg7[%c0_15, %c0_16] : memref<1x128xf32, #tpu.memory_space<vmem>>, vector<1x128xf32>
    %19 = vector.broadcast %18 : vector<1x128xf32> to vector<16x128xf32>
    %20 = arith.addf %17, %19 : vector<16x128xf32>
    %cst_17 = arith.constant dense<0xFF800000> : vector<16xf32>
    %21 = vector.multi_reduction <maximumf>, %20, %cst_17 [1] : vector<16x128xf32> to vector<16xf32>
    %22 = vector.shape_cast %21 : vector<16xf32> to vector<16x1xf32>
    %23 = vector.broadcast %22 : vector<16x1xf32> to vector<16x128xf32>
    %24 = arith.subf %20, %23 : vector<16x128xf32>
    %25 = math.exp %24 : vector<16x128xf32>
    %cst_18 = arith.constant dense<0.000000e+00> : vector<16xf32>
    %26 = vector.multi_reduction <add>, %25, %cst_18 [1] : vector<16x128xf32> to vector<16xf32>
    %27 = vector.shape_cast %26 : vector<16xf32> to vector<16x1xf32>
    %28 = vector.broadcast %27 : vector<16x1xf32> to vector<16x128xf32>
    %29 = arith.divf %25, %28 : vector<16x128xf32>
    %c0_19 = arith.constant 0 : index
    %c0_20 = arith.constant 0 : index
    %30 = vector.load %arg8[%c0_19, %c0_20] : memref<16x128xf32, #tpu.memory_space<vmem>>, vector<16x128xf32>
    tpu.vector_store %arg8[%c0_19, %c0_20], %29 {strides = array<i32>} : memref<16x128xf32, #tpu.memory_space<vmem>>, vector<16x128xf32>,
    return
  }
  func.func @transform_0(%arg0: i32) -> (i32, i32) {
    %c0_i32 = arith.constant 0 : i32
    %c0_i32_0 = arith.constant 0 : i32
    return %arg0, %c0_i32 : i32, i32
  }
  func.func @transform_1(%arg0: i32) -> (i32, i32) {
    %c0_i32 = arith.constant 0 : i32
    %c0_i32_0 = arith.constant 0 : i32
    %c0_i32_1 = arith.constant 0 : i32
    return %c0_i32, %c0_i32_0 : i32, i32
  }
  func.func @transform_2(%arg0: i32) -> (i32, i32) {
    %c0_i32 = arith.constant 0 : i32
    %c0_i32_0 = arith.constant 0 : i32
    %c0_i32_1 = arith.constant 0 : i32
    return %c0_i32, %c0_i32_0 : i32, i32
  }
  func.func @transform_3(%arg0: i32) -> (i32, i32) {
    %c0_i32 = arith.constant 0 : i32
    %c0_i32_0 = arith.constant 0 : i32
    %c0_i32_1 = arith.constant 0 : i32
    return %c0_i32, %c0_i32_0 : i32, i32
  }
  func.func @transform_4(%arg0: i32) -> (i32, i32) {
    %c0_i32 = arith.constant 0 : i32
    %c0_i32_0 = arith.constant 0 : i32
    %c0_i32_1 = arith.constant 0 : i32
    return %c0_i32, %c0_i32_0 : i32, i32
  }
  func.func @transform_5(%arg0: i32) -> (i32, i32) {
    %c0_i32 = arith.constant 0 : i32
    %c0_i32_0 = arith.constant 0 : i32
    %c0_i32_1 = arith.constant 0 : i32
    return %c0_i32, %c0_i32_0 : i32, i32
  }
  func.func @transform_6(%arg0: i32) -> (i32, i32) {
    %c0_i32 = arith.constant 0 : i32
    %c0_i32_0 = arith.constant 0 : i32
    %c0_i32_1 = arith.constant 0 : i32
    return %c0_i32, %c0_i32_0 : i32, i32
  }
  func.func @transform_7(%arg0: i32) -> (i32, i32) {
    %c0_i32 = arith.constant 0 : i32
    %c0_i32_0 = arith.constant 0 : i32
    return %arg0, %c0_i32 : i32, i32
  }
}

</mosaic_0001>

<bundles_post_ra>
// kernel: _mlp_calw_forward_impl.1
= control target key start
LH: loop header
LB: loop body
LE: loop exit
PB: predicated region body
PF: predicated region fallthrough
CT: control target
= control target key end

     0   :  { %vm43_vm0 = vcmask 1043456   ;;  %vm36_vm1 = vcmask 31744   ;;  %s700_s1 = inlined_call_operand.vmem [shape: f32[4,128], index: 1, kind: input, shape index: {}]   ;;  %s701_s0 = inlined_call_operand.vmem [shape: f32[16,4], index: 0, kind: input, shape index: {}]   ;;  %s702_s3 = inlined_call_operand.vmem [shape: f32[128,128], index: 3, kind: input, shape index: {}]   ;;  %s703_s5 = inlined_call_operand.vmem [shape: f32[128,128], index: 5, kind: input, shape index: {}]   ;;  %s704_s2 = inlined_call_operand.vmem [shape: f32[1,128], index: 2, kind: input, shape index: {}]   ;;  %s705_s4 = inlined_call_operand.vmem [shape: f32[1,128], index: 4, kind: input, shape index: {}]   ;;  %s706_s6 = inlined_call_operand.vmem [shape: f32[1,128], index: 6, kind: input, shape index: {}]   ;;  %s707_s7 = inlined_call_operand.vmem [shape: f32[16,128], index: 7, kind: output, shape index: {}]  }
   0x1   :  { %v28_v0 = vld [vmem:[%s700_s1] sm:$0xf]  ;;  %v27_v2 = vld [vmem:[%s701_s0 + $0x8] sm:$0xff]  ;;  %v124_v5 = vld [vmem:[%s702_s3 + $0x10] sm:$0xff] }
   0x2   :  { %v26_v1 = vld [vmem:[%s701_s0] sm:$0xff]  ;;  %393 = vmatprep.subr.msk.mxu0 %vm43_vm0, %v28_v0  ;;  %v123_v4 = vld [vmem:[%s702_s3 + $0x8] sm:$0xff]  ;;  %v125_v7 = vld [vmem:[%s702_s3 + $0x18] sm:$0xff] }
   0x3   :  { %395 = vmatprep.mubr.msk.f32.mxu0 %vm36_vm1, %v26_v1  ;;  %v122_v3 = vld [vmem:[%s702_s3] sm:$0xff]  ;;  %394 = vmatpush3.msk.msra.mxu0 %vm43_vm0, %v28_v0  ;;  %v472_v8 = vpack.c.bf16 %v125_v7, %v124_v5  ;;  %v127_v10 = vld [vmem:[%s702_s3 + $0x28] sm:$0xff]  ;;  %v128_v12 = vld [vmem:[%s702_s3 + $0x30] sm:$0xff] }
   0x4   :  { %v468_v6 = vpack.c.bf16 %v123_v4, %v122_v3  ;;  %396 = vmatmul.mubr.msk.f32.vlgmr.msra.gmra.mrb[0].mxu0 %vm36_vm1, %v27_v2  ;;  %v126_v9 = vld [vmem:[%s702_s3 + $0x20] sm:$0xff]  ;;  %v129_v13 = vld [vmem:[%s702_s3 + $0x38] sm:$0xff]  ;;  %v131_v16 = vld [vmem:[%s702_s3 + $0x48] sm:$0xff] }
   0x5   :  { %v476_v11 = vpack.c.bf16 %v127_v10, %v126_v9  ;;  %v480_v14 = vpack.c.bf16 %v129_v13, %v128_v12  ;;  %v130_v15 = vld [vmem:[%s702_s3 + $0x40] sm:$0xff]  ;;  %v132_v18 = vld [vmem:[%s702_s3 + $0x50] sm:$0xff]  ;;  %v133_v19 = vld [vmem:[%s702_s3 + $0x58] sm:$0xff] }
   0x6   :  { %469 = vmatprep.subr.bf16.mxu1 %v468_v6  ;;  %v484_v17 = vpack.c.bf16 %v131_v16, %v130_v15  ;;  %v488_v20 = vpack.c.bf16 %v133_v19, %v132_v18  ;;  %v134_v21 = vld [vmem:[%s702_s3 + $0x60] sm:$0xff]  ;;  %v135_v22 = vld [vmem:[%s702_s3 + $0x68] sm:$0xff]  ;;  %v136_v24 = vld [vmem:[%s702_s3 + $0x70] sm:$0xff] }
   0x7   :  { %471 = vmatpush3.bf16.msra.mxu1 %v468_v6  ;;  %v492_v23 = vpack.c.bf16 %v135_v22, %v134_v21  ;;  %v137_v25 = vld [vmem:[%s702_s3 + $0x78] sm:$0xff]  ;;  %v226_v27 = vld [vmem:[%s703_s5] sm:$0xff]  ;;  %v227_v28 = vld [vmem:[%s703_s5 + $0x8] sm:$0xff] }
   0x8   :  { %473 = vmatprep.subr.bf16.mxu1 %v472_v8  ;;  %v496_v26 = vpack.c.bf16 %v137_v25, %v136_v24  ;;  %v228_v29 = vld [vmem:[%s703_s5 + $0x10] sm:$0xff]  ;;  %v500_v30 = vpack.c.bf16 %v227_v28, %v226_v27  ;;  %v229_v31 = vld [vmem:[%s703_s5 + $0x18] sm:$0xff]  ;;  %v230_v33 = vld [vmem:[%s703_s5 + $0x20] sm:$0xff] }
   0x9   :  { %v504_v32 = vpack.c.bf16 %v229_v31, %v228_v29  ;;  %v231_v34 = vld [vmem:[%s703_s5 + $0x28] sm:$0xff]  ;;  %v232_v36 = vld [vmem:[%s703_s5 + $0x30] sm:$0xff]  ;;  %v233_v37 = vld [vmem:[%s703_s5 + $0x38] sm:$0xff] }
   0xa   :  { %501 = vmatprep.subr.bf16.mxu0 %v500_v30  ;;  %v508_v35 = vpack.c.bf16 %v231_v34, %v230_v33  ;;  %v512_v38 = vpack.c.bf16 %v233_v37, %v232_v36  ;;  %v234_v39 = vld [vmem:[%s703_s5 + $0x40] sm:$0xff]  ;;  %v235_v40 = vld [vmem:[%s703_s5 + $0x48] sm:$0xff]  ;;  %v236_v42 = vld [vmem:[%s703_s5 + $0x50] sm:$0xff] }
   0xb   :  { %475 = vmatpush3.bf16.msra.mxu1 %v472_v8  ;;  %503 = vmatpush3.bf16.msra.mxu0 %v500_v30  ;;  %v516_v41 = vpack.c.bf16 %v235_v40, %v234_v39  ;;  %v237_v43 = vld [vmem:[%s703_s5 + $0x58] sm:$0xff]  ;;  %v348_v45 = vld [vmem:[%s704_s2] ss:$0 sm:$0xff]  ;;  %v239_v51 = vld [vmem:[%s703_s5 + $0x68] sm:$0xff] }
   0xc   :  { %477 = vmatprep.subr.bf16.mxu1 %v476_v11  ;;  %505 = vmatprep.subr.bf16.mxu0 %v504_v32  ;;  %v520_v44 = vpack.c.bf16 %v237_v43, %v236_v42  ;;  %v238_v50 = vld [vmem:[%s703_s5 + $0x60] sm:$0xff]  ;;  %v240_v53 = vld [vmem:[%s703_s5 + $0x70] sm:$0xff]  ;;  %v241_v54 = vld [vmem:[%s703_s5 + $0x78] sm:$0xff] }
   0xd   :  { %v524_v52 = vpack.c.bf16 %v239_v51, %v238_v50  ;;  %v528_v55 = vpack.c.bf16 %v241_v54, %v240_v53  ;;  %v352_v56 = vld [vmem:[%s705_s4] ss:$0 sm:$0xff] }
   0xe   :  { %v353_v1 = vld [vmem:[%s706_s6] ss:$0 sm:$0xff] }
   0xf   :  { %479 = vmatpush3.bf16.msra.mxu1 %v476_v11  ;;  %507 = vmatpush3.bf16.msra.mxu0 %v504_v32 }
  0x10   :  { %481 = vmatprep.subr.bf16.mxu1 %v480_v14  ;;  %509 = vmatprep.subr.bf16.mxu0 %v508_v35 }
  0x13   :  { %483 = vmatpush3.bf16.msra.mxu1 %v480_v14  ;;  %511 = vmatpush3.bf16.msra.mxu0 %v508_v35 }
  0x14   :  { %485 = vmatprep.subr.bf16.mxu1 %v484_v17  ;;  %513 = vmatprep.subr.bf16.mxu0 %v512_v38 }
  0x17   :  { %487 = vmatpush3.bf16.msra.mxu1 %v484_v17  ;;  %515 = vmatpush3.bf16.msra.mxu0 %v512_v38 }
  0x18   :  { %489 = vmatprep.subr.bf16.mxu1 %v488_v20  ;;  %517 = vmatprep.subr.bf16.mxu0 %v516_v41 }
  0x1b   :  { %491 = vmatpush3.bf16.msra.mxu1 %v488_v20  ;;  %519 = vmatpush3.bf16.msra.mxu0 %v516_v41 }
  0x1c   :  { %493 = vmatprep.subr.bf16.mxu1 %v492_v23  ;;  %521 = vmatprep.subr.bf16.mxu0 %v520_v44 }
  0x1f   :  { %495 = vmatpush3.bf16.msra.mxu1 %v492_v23  ;;  %523 = vmatpush3.bf16.msra.mxu0 %v520_v44 }
  0x20   :  { %497 = vmatprep.subr.bf16.mxu1 %v496_v26  ;;  %525 = vmatprep.subr.bf16.mxu0 %v524_v52 }
  0x23   :  { %499 = vmatpush3.bf16.msra.mxu1 %v496_v26  ;;  %527 = vmatpush3.bf16.msra.mxu0 %v524_v52 }
  0x24   :  { %529 = vmatprep.subr.bf16.mxu0 %v528_v55 }
  0x27   :  { %531 = vmatpush3.bf16.msra.mxu0 %v528_v55 }
  0xd7   :  { %v397_v46 = vpop.f32.mrb[0].mxu0 }
  0xd8   :  { %v113_v47 = vpop.f32.mrb[1].mxu0  ;;  %v119_v49 = vadd.f32 %v397_v46, %v348_v45 }
  0xd9   :  { %v114_v48 = vadd.f32 %v348_v45, %v113_v47 }
  0xdb   :  { %430 = vmatprep.mubr.f32.mxu1 %v114_v48 }
  0xdc   :  { %431 = vmatmul.mubr.f32.vlgmr.msra.gmra.mrb[0].mxu1 %v119_v49 }
 0x1af   :  { %v432_v57 = vpop.f32.mrb[0].mxu1 }
 0x1b0   :  { %v217_v58 = vadd.f32 %v432_v57, %v352_v56  ;;  %v211_v59 = vpop.f32.mrb[1].mxu1 }
 0x1b1   :  { %v212_v60 = vadd.f32 %v352_v56, %v211_v59 }
 0x1b2   :  { %v223_v61 = vmul.f32 0.01, %v217_v58  ;;  %vm221_vm2 = vcmp.ge.f32.partialorder %v217_v58, 0.0 }
 0x1b3   :  { %v222_v62 = vmul.f32 0.01, %v212_v60  ;;  %vm220_vm3 = vcmp.ge.f32.partialorder %v212_v60, 0.0 }
 0x1b4   :  { %v225_v0 = vsel %vm221_vm2, %v217_v58, %v223_v61 }
 0x1b5   :  { %v224_v63 = vsel %vm220_vm3, %v212_v60, %v222_v62 }
 0x1b6   :  { %465 = vmatprep.mubr.f32.mxu0 %v224_v63 }
 0x1b7   :  { %466 = vmatmul.mubr.f32.vlgmr.msra.gmra.mrb[2].mxu0 %v225_v0 }
 0x28a   :  { %v467_v2 = vpop.f32.mrb[2].mxu0 }
 0x28b   :  { %v315_v3 = vpop.f32.mrb[3].mxu0  ;;  %v321_v5 = vadd.f32 %v467_v2, %v353_v1 }
 0x28c   :  { %v316_v4 = vadd.f32 %v353_v1, %v315_v3 }
 0x28e   :  { %324 = vmax.xlane.f32.xlu0 %v316_v4 }
 0x292   :  { %326 = vmax.xlane.f32.xlu0 %v321_v5 }
 0x31b   :  { %v325_v6 = vpop.xlane.xlu0 %324 }
 0x31c   :  { %v328_v7 = vsub.f32 %v316_v4, %v325_v6 }
 0x31e   :  { %v330_v8 = vmul.f32 1.442695, %v328_v7 }
 0x31f   :  { %v327_v9 = vpop.xlane.xlu0 %326 }
 0x320   :  { %532 = vpow2.f32 %v330_v8  ;;  %v329_v10 = vsub.f32 %v321_v5, %v327_v9 }
 0x322   :  { %v332_v11 = vmul.f32 1.442695, %v329_v10 }
 0x324   :  { %534 = vpow2.f32 %v332_v11 }
 0x32a   :  { %v533_v12 = vpop.eup %532 }
 0x32b   :  { %334 = vadd.xlane.f32.xlu1 %v533_v12 }
 0x32e   :  { %v535_v13 = vpop.eup %534 }
 0x32f   :  { %336 = vadd.xlane.f32.xlu1 %v535_v13 }
 0x3b8   :  { %v335_v14 = vpop.xlane.xlu1 %334 }
 0x3b9   :  { %536 = vrcp.f32 %v335_v14 }
 0x3bc   :  { %v337_v15 = vpop.xlane.xlu1 %336 }
 0x3bd   :  { %538 = vrcp.f32 %v337_v15 }
 0x3c3   :  { %v537_v16 = vpop.eup %536 }
 0x3c4   :  { %v339_v17 = vmul.f32 %v537_v16, %v533_v12 }
 0x3c6   :  { %342 = vst [vmem:[%s707_s7] sm:$0xff] %v339_v17 }
 0x3c7   :  { %v539_v18 = vpop.eup %538 }
 0x3c8   :  { %v341_v19 = vmul.f32 %v539_v18, %v535_v13 }
 0x3ca   :  { %343 = vst [vmem:[%s707_s7 + $0x8] sm:$0xff] %v341_v19 }

</bundles_post_ra>
